<compile_context>
chip_gen: v7x
topology: tpu7x:2x2x1
jax: 0.10.0
libtpu: 0.0.40
codegen_flags: <defaults>
</compile_context>

<pallas_src>
import functools
import math

import jax
import jax.numpy as jnp
from jax import lax
from jax.experimental import pallas as pl
from jax.experimental.pallas import tpu as pltpu


def _mhsa_kernel(xf_ref, xq_ref, wq_ref, wk_ref, wv_ref, o_ref, k_scr, v_scr, *,
                 norm_fact, num_heads, dk, dv):
    # xf_ref : (1, n, dim_in)    full sequence (for K/V), block constant across q-tiles
    # xq_ref : (1, tq, dim_in)   current q-row tile
    # wq_ref : (dim_in, dim_k)   full-width Q projection (already transposed)
    # wk_ref : (dim_in, dim_k)
    # wv_ref : (dim_in, dim_v)
    # o_ref  : (1, tq, dim_v)    lane-dense output block
    # k_scr  : (n, dim_k) VMEM scratch — K projection, resident across q-tiles
    # v_scr  : (n, dim_v) VMEM scratch — V projection, resident across q-tiles

    # Compute full-width K/V once per batch element (first q-tile only).
    @pl.when(pl.program_id(1) == 0)
    def _():
        xf = xf_ref[0]                                                  # (n, dim_in)
        k_scr[...] = jnp.dot(xf, wk_ref[...], preferred_element_type=jnp.float32)
        v_scr[...] = jnp.dot(xf, wv_ref[...], preferred_element_type=jnp.float32)

    xq = xq_ref[0]                                                      # (tq, dim_in)
    # Fold 1/sqrt(dk) into q: touches tq*dim_k elements instead of tq*n.
    q = jnp.dot(xq, wq_ref[...], preferred_element_type=jnp.float32) * norm_fact

    k = k_scr[...]                                                      # (n, dim_k)
    v = v_scr[...]                                                      # (n, dim_v)

    outs = []
    for h in range(num_heads):                                          # static unroll
        qh = q[:, h * dk:(h + 1) * dk]                                  # (tq, dk)
        kh = k[:, h * dk:(h + 1) * dk]                                  # (n, dk)
        vh = v[:, h * dv:(h + 1) * dv]                                  # (n, dv)

        # q @ k^T via dot_general contracting the last dims (no explicit transpose).
        s = lax.dot_general(qh, kh, (((1,), (1,)), ((), ())),
                            preferred_element_type=jnp.float32)         # (tq, n)

        # Numerically-stable softmax; denominator reciprocal on the EUP.
        m = jnp.max(s, axis=-1, keepdims=True)
        e = jnp.exp(s - m)
        l = jnp.sum(e, axis=-1, keepdims=True)
        p = e * pl.reciprocal(l, approx=True)

        outs.append(jnp.dot(p, vh, preferred_element_type=jnp.float32)) # (tq, dv)

    # Heads concatenated along the feature axis -> single lane-dense store.
    o_ref[0] = jnp.concatenate(outs, axis=-1).astype(o_ref.dtype)


def multi_head_self_attention(x, wq, wk, wv, num_heads):
    """
    x      : (batch, n, dim_in) float32
    wq, wk : (dim_k, dim_in)   -- PyTorch nn.Linear weight layout (out, in), no bias
    wv     : (dim_v, dim_in)
    Returns (batch, n, dim_v), identical to the PyTorch module's forward.
    """
    batch, n, dim_in = x.shape
    dim_k = wq.shape[0]
    dim_v = wv.shape[0]
    nh = num_heads
    dk = dim_k // nh
    dv = dim_v // nh
    norm_fact = 1.0 / math.sqrt(dk)

    # nn.Linear computes x @ W.T ; pre-transpose once so the kernel does x @ W_t.
    wq_t = wq.T  # (dim_in, dim_k)
    wk_t = wk.T  # (dim_in, dim_k)
    wv_t = wv.T  # (dim_in, dim_v)

    # q-row tiling bounds VMEM for the score matrix to tq x n (flash-style rows;
    # full-K softmax per tile, so no online-softmax recurrence / masking needed).
    if n > 256 and n % 128 == 0:
        tq = 128
    else:
        tq = n
    n_q_tiles = n // tq

    kernel = functools.partial(_mhsa_kernel, norm_fact=norm_fact,
                               num_heads=nh, dk=dk, dv=dv)

    # TODO(synk): for v6e/v7x, casting x / weights to bf16 (keeping f32 accumulation
    # and softmax) would roughly double MXU throughput and halve DMA bytes; kept f32
    # here to match the PyTorch reference numerics exactly.
    out = pl.pallas_call(
        kernel,
        out_shape=jax.ShapeDtypeStruct((batch, n, dim_v), x.dtype),
        grid_spec=pltpu.PrefetchScalarGridSpec(
            num_scalar_prefetch=0,
            grid=(batch, n_q_tiles),
            in_specs=[
                pl.BlockSpec((1, n, dim_in), lambda b, qi: (b, 0, 0)),    # full x (K/V)
                pl.BlockSpec((1, tq, dim_in), lambda b, qi: (b, qi, 0)),  # q-row tile
                pl.BlockSpec((dim_in, dim_k), lambda b, qi: (0, 0)),      # W_q (resident)
                pl.BlockSpec((dim_in, dim_k), lambda b, qi: (0, 0)),      # W_k (resident)
                pl.BlockSpec((dim_in, dim_v), lambda b, qi: (0, 0)),      # W_v (resident)
            ],
            out_specs=pl.BlockSpec((1, tq, dim_v), lambda b, qi: (b, qi, 0)),
            scratch_shapes=[
                pltpu.VMEM((n, dim_k), jnp.float32),   # K projection
                pltpu.VMEM((n, dim_v), jnp.float32),   # V projection
            ],
        ),
        compiler_params=pltpu.CompilerParams(
            dimension_semantics=("parallel", "arbitrary"),
            vmem_limit_bytes=64 * 1024 * 1024,
        ),
    )(x, x, wq_t, wk_t, wv_t)

    return out


def _reference(x, wq, wk, wv, num_heads):
    batch, n, dim_in = x.shape
    dim_k = wq.shape[0]
    dim_v = wv.shape[0]
    nh = num_heads
    dk = dim_k // nh
    dv = dim_v // nh
    q = (x @ wq.T).reshape(batch, n, nh, dk).transpose(0, 2, 1, 3)
    k = (x @ wk.T).reshape(batch, n, nh, dk).transpose(0, 2, 1, 3)
    v = (x @ wv.T).reshape(batch, n, nh, dv).transpose(0, 2, 1, 3)
    dist = jnp.einsum("bhnd,bhmd->bhnm", q, k) * (1.0 / math.sqrt(dk))
    dist = jax.nn.softmax(dist, axis=-1)
    att = jnp.einsum("bhnm,bhmd->bhnd", dist, v)
    return att.transpose(0, 2, 1, 3).reshape(batch, n, dim_v)


if __name__ == "__main__":
    # Small shapes consistent with the module's forward: x is (batch, n, dim_in).
    batch, n, dim_in = 2, 8, 32
    dim_k, dim_v, num_heads = 32, 32, 4

    key = jax.random.PRNGKey(0)
    kx, kq, kk, kv = jax.random.split(key, 4)
    x = jax.random.normal(kx, (batch, n, dim_in), dtype=jnp.float32)
    # Deterministic synthetic weights (nn.Linear weight layout: (out_features, in_features)).
    wq = jax.random.normal(kq, (dim_k, dim_in), dtype=jnp.float32) * 0.1
    wk = jax.random.normal(kk, (dim_k, dim_in), dtype=jnp.float32) * 0.1
    wv = jax.random.normal(kv, (dim_v, dim_in), dtype=jnp.float32) * 0.1

    out = multi_head_self_attention(x, wq, wk, wv, num_heads)
    out = jax.block_until_ready(out)

    ref = _reference(x, wq, wk, wv, num_heads)
    assert out.shape == (batch, n, dim_v)
    # Tolerance accounts for the approximate EUP reciprocal in the softmax denominator.
    assert jnp.allclose(out, ref, atol=2e-3, rtol=2e-3), "mismatch vs reference"
    print("KERNEL_OK")
</pallas_src>

<mosaic_0001>
module attributes {stable_mosaic.version = 11 : i64} {
  func.func @_mhsa_kernel(%arg0: i32, %arg1: i32, %arg2: memref<1x8x32xf32, #tpu.memory_space<vmem>>, %arg3: memref<1x8x32xf32, #tpu.memory_space<vmem>>, %arg4: memref<32x32xf32, #tpu.memory_space<vmem>>, %arg5: memref<32x32xf32, #tpu.memory_space<vmem>>, %arg6: memref<32x32xf32, #tpu.memory_space<vmem>>, %arg7: memref<1x8x32xf32, #tpu.memory_space<vmem>>, %arg8: memref<8x32xf32, #tpu.memory_space<vmem>>, %arg9: memref<8x32xf32, #tpu.memory_space<vmem>>) attributes {dimension_semantics = [#tpu.dimension_semantics<parallel>, #tpu.dimension_semantics<arbitrary>], iteration_bounds = array<i64: 2, 1>, scalar_prefetch = 0 : i64, scratch_operands = 2 : i64, tpu.core_type = #tpu.core_type<tc>, window_params = [{transform_indices = @transform_0, window_bounds = array<i64: 1, 8, 32>}, {transform_indices = @transform_1, window_bounds = array<i64: 1, 8, 32>}, {pipeline_mode = #tpu.pipeline_mode<synchronous>, transform_indices = @transform_2, window_bounds = array<i64: 32, 32>}, {pipeline_mode = #tpu.pipeline_mode<synchronous>, transform_indices = @transform_3, window_bounds = array<i64: 32, 32>}, {pipeline_mode = #tpu.pipeline_mode<synchronous>, transform_indices = @transform_4, window_bounds = array<i64: 32, 32>}, {transform_indices = @transform_5, window_bounds = array<i64: 1, 8, 32>}]} {
    %c0_i32 = arith.constant 0 : i32
    %0 = arith.cmpi eq, %arg1, %c0_i32 : i32
    %1 = arith.extui %0 : i1 to i32
    %c0_i32_0 = arith.constant 0 : i32
    %2 = arith.cmpi ne, %1, %c0_i32_0 : i32
    scf.if %2 {
      %c0_29 = arith.constant 0 : index
      %c0_30 = arith.constant 0 : index
      %c0_31 = arith.constant 0 : index
      %75 = vector.load %arg2[%c0_29, %c0_30, %c0_31] : memref<1x8x32xf32, #tpu.memory_space<vmem>>, vector<1x8x32xf32>
      %76 = vector.shape_cast %75 : vector<1x8x32xf32> to vector<8x32xf32>
      %c0_32 = arith.constant 0 : index
      %c0_33 = arith.constant 0 : index
      %77 = vector.load %arg5[%c0_32, %c0_33] : memref<32x32xf32, #tpu.memory_space<vmem>>, vector<32x32xf32>
      %cst_34 = arith.constant dense<0.000000e+00> : vector<8x32xf32>
      %78 = tpu.matmul %76, %77, %cst_34 {dimension_numbers = #tpu.dot_dimension_numbers<[1], [0], [0], [1], [0, 0, 1, 1], [], []>} : vector<8x32xf32>, vector<32x32xf32>, vector<8x32xf32> -> vector<8x32xf32>
      %c0_35 = arith.constant 0 : index
      %c0_36 = arith.constant 0 : index
      %79 = vector.load %arg8[%c0_35, %c0_36] : memref<8x32xf32, #tpu.memory_space<vmem>>, vector<8x32xf32>
      tpu.vector_store %arg8[%c0_35, %c0_36], %78 {strides = array<i32>} : memref<8x32xf32, #tpu.memory_space<vmem>>, vector<8x32xf32>,
      %c0_37 = arith.constant 0 : index
      %c0_38 = arith.constant 0 : index
      %80 = vector.load %arg6[%c0_37, %c0_38] : memref<32x32xf32, #tpu.memory_space<vmem>>, vector<32x32xf32>
      %cst_39 = arith.constant dense<0.000000e+00> : vector<8x32xf32>
      %81 = tpu.matmul %76, %80, %cst_39 {dimension_numbers = #tpu.dot_dimension_numbers<[1], [0], [0], [1], [0, 0, 1, 1], [], []>} : vector<8x32xf32>, vector<32x32xf32>, vector<8x32xf32> -> vector<8x32xf32>
      %c0_40 = arith.constant 0 : index
      %c0_41 = arith.constant 0 : index
      %82 = vector.load %arg9[%c0_40, %c0_41] : memref<8x32xf32, #tpu.memory_space<vmem>>, vector<8x32xf32>
      tpu.vector_store %arg9[%c0_40, %c0_41], %81 {strides = array<i32>} : memref<8x32xf32, #tpu.memory_space<vmem>>, vector<8x32xf32>,
    } else {
    }
    %c0 = arith.constant 0 : index
    %c0_1 = arith.constant 0 : index
    %c0_2 = arith.constant 0 : index
    %3 = vector.load %arg3[%c0, %c0_1, %c0_2] : memref<1x8x32xf32, #tpu.memory_space<vmem>>, vector<1x8x32xf32>
    %4 = vector.shape_cast %3 : vector<1x8x32xf32> to vector<8x32xf32>
    %c0_3 = arith.constant 0 : index
    %c0_4 = arith.constant 0 : index
    %5 = vector.load %arg4[%c0_3, %c0_4] : memref<32x32xf32, #tpu.memory_space<vmem>>, vector<32x32xf32>
    %cst = arith.constant dense<0.000000e+00> : vector<8x32xf32>
    %6 = tpu.matmul %4, %5, %cst {dimension_numbers = #tpu.dot_dimension_numbers<[1], [0], [0], [1], [0, 0, 1, 1], [], []>} : vector<8x32xf32>, vector<32x32xf32>, vector<8x32xf32> -> vector<8x32xf32>
    %cst_5 = arith.constant 0.353553385 : f32
    %7 = vector.broadcast %cst_5 : f32 to vector<8x32xf32>
    %8 = arith.mulf %6, %7 : vector<8x32xf32>
    %c0_6 = arith.constant 0 : index
    %c0_7 = arith.constant 0 : index
    %9 = vector.load %arg8[%c0_6, %c0_7] : memref<8x32xf32, #tpu.memory_space<vmem>>, vector<8x32xf32>
    %c0_8 = arith.constant 0 : index
    %c0_9 = arith.constant 0 : index
    %10 = vector.load %arg9[%c0_8, %c0_9] : memref<8x32xf32, #tpu.memory_space<vmem>>, vector<8x32xf32>
    %11 = vector.extract_strided_slice %8 {offsets = [0, 0], sizes = [8, 8], strides = [1, 1]} : vector<8x32xf32> to vector<8x8xf32>
    %12 = vector.extract_strided_slice %9 {offsets = [0, 0], sizes = [8, 8], strides = [1, 1]} : vector<8x32xf32> to vector<8x8xf32>
    %13 = vector.extract_strided_slice %10 {offsets = [0, 0], sizes = [8, 8], strides = [1, 1]} : vector<8x32xf32> to vector<8x8xf32>
    %cst_10 = arith.constant dense<0.000000e+00> : vector<8x8xf32>
    %14 = tpu.matmul %11, %12, %cst_10 {dimension_numbers = #tpu.dot_dimension_numbers<[1], [1], [0], [0], [0, 0, 1, 0], [], []>} : vector<8x8xf32>, vector<8x8xf32>, vector<8x8xf32> -> vector<8x8xf32>
    %cst_11 = arith.constant dense<0xFF800000> : vector<8xf32>
    %15 = vector.multi_reduction <maximumf>, %14, %cst_11 [1] : vector<8x8xf32> to vector<8xf32>
    %16 = vector.shape_cast %15 : vector<8xf32> to vector<8x1xf32>
    %17 = vector.broadcast %16 : vector<8x1xf32> to vector<8x8xf32>
    %18 = arith.subf %14, %17 : vector<8x8xf32>
    %19 = math.exp %18 : vector<8x8xf32>
    %cst_12 = arith.constant dense<0.000000e+00> : vector<8xf32>
    %20 = vector.multi_reduction <add>, %19, %cst_12 [1] : vector<8x8xf32> to vector<8xf32>
    %21 = vector.shape_cast %20 : vector<8xf32> to vector<8x1xf32>
    %22 = tpu.reciprocal %21 {approx = true} : vector<8x1xf32> -> vector<8x1xf32>
    %23 = vector.broadcast %22 : vector<8x1xf32> to vector<8x8xf32>
    %24 = arith.mulf %19, %23 : vector<8x8xf32>
    %cst_13 = arith.constant dense<0.000000e+00> : vector<8x8xf32>
    %25 = tpu.matmul %24, %13, %cst_13 {dimension_numbers = #tpu.dot_dimension_numbers<[1], [0], [0], [1], [0, 0, 1, 1], [], []>} : vector<8x8xf32>, vector<8x8xf32>, vector<8x8xf32> -> vector<8x8xf32>
    %26 = vector.extract_strided_slice %8 {offsets = [0, 8], sizes = [8, 8], strides = [1, 1]} : vector<8x32xf32> to vector<8x8xf32>
    %27 = vector.extract_strided_slice %9 {offsets = [0, 8], sizes = [8, 8], strides = [1, 1]} : vector<8x32xf32> to vector<8x8xf32>
    %28 = vector.extract_strided_slice %10 {offsets = [0, 8], sizes = [8, 8], strides = [1, 1]} : vector<8x32xf32> to vector<8x8xf32>
    %cst_14 = arith.constant dense<0.000000e+00> : vector<8x8xf32>
    %29 = tpu.matmul %26, %27, %cst_14 {dimension_numbers = #tpu.dot_dimension_numbers<[1], [1], [0], [0], [0, 0, 1, 0], [], []>} : vector<8x8xf32>, vector<8x8xf32>, vector<8x8xf32> -> vector<8x8xf32>
    %cst_15 = arith.constant dense<0xFF800000> : vector<8xf32>
    %30 = vector.multi_reduction <maximumf>, %29, %cst_15 [1] : vector<8x8xf32> to vector<8xf32>
    %31 = vector.shape_cast %30 : vector<8xf32> to vector<8x1xf32>
    %32 = vector.broadcast %31 : vector<8x1xf32> to vector<8x8xf32>
    %33 = arith.subf %29, %32 : vector<8x8xf32>
    %34 = math.exp %33 : vector<8x8xf32>
    %cst_16 = arith.constant dense<0.000000e+00> : vector<8xf32>
    %35 = vector.multi_reduction <add>, %34, %cst_16 [1] : vector<8x8xf32> to vector<8xf32>
    %36 = vector.shape_cast %35 : vector<8xf32> to vector<8x1xf32>
    %37 = tpu.reciprocal %36 {approx = true} : vector<8x1xf32> -> vector<8x1xf32>
    %38 = vector.broadcast %37 : vector<8x1xf32> to vector<8x8xf32>
    %39 = arith.mulf %34, %38 : vector<8x8xf32>
    %cst_17 = arith.constant dense<0.000000e+00> : vector<8x8xf32>
    %40 = tpu.matmul %39, %28, %cst_17 {dimension_numbers = #tpu.dot_dimension_numbers<[1], [0], [0], [1], [0, 0, 1, 1], [], []>} : vector<8x8xf32>, vector<8x8xf32>, vector<8x8xf32> -> vector<8x8xf32>
    %41 = vector.extract_strided_slice %8 {offsets = [0, 16], sizes = [8, 8], strides = [1, 1]} : vector<8x32xf32> to vector<8x8xf32>
    %42 = vector.extract_strided_slice %9 {offsets = [0, 16], sizes = [8, 8], strides = [1, 1]} : vector<8x32xf32> to vector<8x8xf32>
    %43 = vector.extract_strided_slice %10 {offsets = [0, 16], sizes = [8, 8], strides = [1, 1]} : vector<8x32xf32> to vector<8x8xf32>
    %cst_18 = arith.constant dense<0.000000e+00> : vector<8x8xf32>
    %44 = tpu.matmul %41, %42, %cst_18 {dimension_numbers = #tpu.dot_dimension_numbers<[1], [1], [0], [0], [0, 0, 1, 0], [], []>} : vector<8x8xf32>, vector<8x8xf32>, vector<8x8xf32> -> vector<8x8xf32>
    %cst_19 = arith.constant dense<0xFF800000> : vector<8xf32>
    %45 = vector.multi_reduction <maximumf>, %44, %cst_19 [1] : vector<8x8xf32> to vector<8xf32>
    %46 = vector.shape_cast %45 : vector<8xf32> to vector<8x1xf32>
    %47 = vector.broadcast %46 : vector<8x1xf32> to vector<8x8xf32>
    %48 = arith.subf %44, %47 : vector<8x8xf32>
    %49 = math.exp %48 : vector<8x8xf32>
    %cst_20 = arith.constant dense<0.000000e+00> : vector<8xf32>
    %50 = vector.multi_reduction <add>, %49, %cst_20 [1] : vector<8x8xf32> to vector<8xf32>
    %51 = vector.shape_cast %50 : vector<8xf32> to vector<8x1xf32>
    %52 = tpu.reciprocal %51 {approx = true} : vector<8x1xf32> -> vector<8x1xf32>
    %53 = vector.broadcast %52 : vector<8x1xf32> to vector<8x8xf32>
    %54 = arith.mulf %49, %53 : vector<8x8xf32>
    %cst_21 = arith.constant dense<0.000000e+00> : vector<8x8xf32>
    %55 = tpu.matmul %54, %43, %cst_21 {dimension_numbers = #tpu.dot_dimension_numbers<[1], [0], [0], [1], [0, 0, 1, 1], [], []>} : vector<8x8xf32>, vector<8x8xf32>, vector<8x8xf32> -> vector<8x8xf32>
    %56 = vector.extract_strided_slice %8 {offsets = [0, 24], sizes = [8, 8], strides = [1, 1]} : vector<8x32xf32> to vector<8x8xf32>
    %57 = vector.extract_strided_slice %9 {offsets = [0, 24], sizes = [8, 8], strides = [1, 1]} : vector<8x32xf32> to vector<8x8xf32>
    %58 = vector.extract_strided_slice %10 {offsets = [0, 24], sizes = [8, 8], strides = [1, 1]} : vector<8x32xf32> to vector<8x8xf32>
    %cst_22 = arith.constant dense<0.000000e+00> : vector<8x8xf32>
    %59 = tpu.matmul %56, %57, %cst_22 {dimension_numbers = #tpu.dot_dimension_numbers<[1], [1], [0], [0], [0, 0, 1, 0], [], []>} : vector<8x8xf32>, vector<8x8xf32>, vector<8x8xf32> -> vector<8x8xf32>
    %cst_23 = arith.constant dense<0xFF800000> : vector<8xf32>
    %60 = vector.multi_reduction <maximumf>, %59, %cst_23 [1] : vector<8x8xf32> to vector<8xf32>
    %61 = vector.shape_cast %60 : vector<8xf32> to vector<8x1xf32>
    %62 = vector.broadcast %61 : vector<8x1xf32> to vector<8x8xf32>
    %63 = arith.subf %59, %62 : vector<8x8xf32>
    %64 = math.exp %63 : vector<8x8xf32>
    %cst_24 = arith.constant dense<0.000000e+00> : vector<8xf32>
    %65 = vector.multi_reduction <add>, %64, %cst_24 [1] : vector<8x8xf32> to vector<8xf32>
    %66 = vector.shape_cast %65 : vector<8xf32> to vector<8x1xf32>
    %67 = tpu.reciprocal %66 {approx = true} : vector<8x1xf32> -> vector<8x1xf32>
    %68 = vector.broadcast %67 : vector<8x1xf32> to vector<8x8xf32>
    %69 = arith.mulf %64, %68 : vector<8x8xf32>
    %cst_25 = arith.constant dense<0.000000e+00> : vector<8x8xf32>
    %70 = tpu.matmul %69, %58, %cst_25 {dimension_numbers = #tpu.dot_dimension_numbers<[1], [0], [0], [1], [0, 0, 1, 1], [], []>} : vector<8x8xf32>, vector<8x8xf32>, vector<8x8xf32> -> vector<8x8xf32>
    %71 = tpu.concatenate %25, %40, %55, %70 in 1 : vector<8x8xf32>, vector<8x8xf32>, vector<8x8xf32>, vector<8x8xf32> -> vector<8x32xf32>
    %c0_26 = arith.constant 0 : index
    %c0_27 = arith.constant 0 : index
    %c0_28 = arith.constant 0 : index
    %72 = vector.load %arg7[%c0_26, %c0_27, %c0_28] : memref<1x8x32xf32, #tpu.memory_space<vmem>>, vector<1x8x32xf32>
    %73 = vector.shape_cast %72 : vector<1x8x32xf32> to vector<8x32xf32>
    %74 = vector.shape_cast %71 : vector<8x32xf32> to vector<1x8x32xf32>
    tpu.vector_store %arg7[%c0_26, %c0_27, %c0_28], %74 {strides = array<i32>} : memref<1x8x32xf32, #tpu.memory_space<vmem>>, vector<1x8x32xf32>,
    return
  }
  func.func @transform_0(%arg0: i32, %arg1: i32) -> (i32, i32, i32) {
    %c0_i32 = arith.constant 0 : i32
    %c0_i32_0 = arith.constant 0 : i32
    %c0_i32_1 = arith.constant 0 : i32
    return %arg0, %c0_i32, %c0_i32_0 : i32, i32, i32
  }
  func.func @transform_1(%arg0: i32, %arg1: i32) -> (i32, i32, i32) {
    %c0_i32 = arith.constant 0 : i32
    %c0_i32_0 = arith.constant 0 : i32
    return %arg0, %arg1, %c0_i32 : i32, i32, i32
  }
  func.func @transform_2(%arg0: i32, %arg1: i32) -> (i32, i32) {
    %c0_i32 = arith.constant 0 : i32
    %c0_i32_0 = arith.constant 0 : i32
    %c0_i32_1 = arith.constant 0 : i32
    return %c0_i32, %c0_i32_0 : i32, i32
  }
  func.func @transform_3(%arg0: i32, %arg1: i32) -> (i32, i32) {
    %c0_i32 = arith.constant 0 : i32
    %c0_i32_0 = arith.constant 0 : i32
    %c0_i32_1 = arith.constant 0 : i32
    return %c0_i32, %c0_i32_0 : i32, i32
  }
  func.func @transform_4(%arg0: i32, %arg1: i32) -> (i32, i32) {
    %c0_i32 = arith.constant 0 : i32
    %c0_i32_0 = arith.constant 0 : i32
    %c0_i32_1 = arith.constant 0 : i32
    return %c0_i32, %c0_i32_0 : i32, i32
  }
  func.func @transform_5(%arg0: i32, %arg1: i32) -> (i32, i32, i32) {
    %c0_i32 = arith.constant 0 : i32
    %c0_i32_0 = arith.constant 0 : i32
    return %arg0, %arg1, %c0_i32 : i32, i32, i32
  }
}

</mosaic_0001>

<bundles_post_ra>
// kernel: tpu_custom_call.1
= control target key start
LH: loop header
LB: loop body
LE: loop exit
PB: predicated region body
PF: predicated region fallthrough
CT: control target
= control target key end

     0   :  { %s2361_s0 = inlined_call_operand.hbm [shape: f32[2,8,32], index: 0, kind: input, shape index: {}]   ;;  %s2362_s1 = inlined_call_operand.hbm [shape: f32[2,8,32], index: 1, kind: input, shape index: {}]   ;;  %s2363_s2 = inlined_call_operand.hbm [shape: f32[32,32], index: 2, kind: input, shape index: {}]   ;;  %s2364_s3 = inlined_call_operand.hbm [shape: f32[32,32], index: 3, kind: input, shape index: {}]   ;;  %s2365_s4 = inlined_call_operand.hbm [shape: f32[32,32], index: 4, kind: input, shape index: {}]   ;;  %s2366_s5 = inlined_call_operand.hbm [shape: f32[2,8,32], index: 5, kind: output, shape index: {}]  }
   0x1   :  { %2372 = sst [smem:[#allocation20_spill]] %s2363_s2 }
   0x2   :  { %2373 = sst [smem:[#allocation21_spill]] %s2364_s3 }
   0x3   :  { %2374 = sst [smem:[#allocation22_spill]] %s2365_s4 }
   0x4   :  { %10 = vsyncpa [#allocation5], 0 }
   0x5   :  { %12 = vsyncpa [#allocation5 + $0x1], 0 }
   0x6   :  { %13 = vsyncpa [#allocation8], 0 }
   0x7   :  { %15 = vsyncpa [#allocation8 + $0x1], 0 }
   0x8   :  { %16 = vsyncpa [#allocation11], 0 }
   0x9   :  { %17 = vsyncpa [#allocation6], 0 }
   0xa   :  { %19 = vsyncpa [#allocation6 + $0x1], 0  ;;  %s1970_s18 = smov 0   ;;  %s1972_s19 = smov 0  }
   0xb   :  { %s1974_s20 = smov 0   ;;  %s1976_s21 = smov 0  }
   0xc   :  { %s1978_s22 = smov 0   ;;  %s1980_s23 = smov 0  }
   0xd LB: > { %s2001_s24 = sadd.s32 4294967295, %s1921_s23   ;;  %s1400_s25 = sadd.s32 4294967294, %s1921_s23   ;;  %s1921_s23 = sphi %s1980_s23, %s25_s23   ;;  %s1917_s22 = sphi %s1978_s22, %s2401_s22   ;;  %s1913_s21 = sphi %s1976_s21, %s2400_s21   ;;  %s1909_s20 = sphi %s1974_s20, %s2399_s20   ;;  %s1905_s19 = sphi %s1972_s19, %s2398_s19   ;;  %s1901_s18 = sphi %s1970_s18, %s2397_s18  }
   0xe   : > { %p57_p0 = scmp.ne.s32.totalorder %s1905_s19, %s1901_s18  ;;  %p2367_p1 = scmp.eq.s32.totalorder %s2001_s24, 0 }
   0xf   : > { %p180_p3 = scmp.eq.s32.totalorder %s1400_s25, 1  ;;  %p1401_p5 = scmp.ge.s32.totalorder %s1921_s23, 1 }
  0x10   : > { %p2010_p4 = por %p2367_p1, %p57_p0  ;;  %p187_p7 = scmp.lt.s32.totalorder %s1921_s23, 3 }
  0x11   : > { %p2015_p6 = por %p180_p3, %p57_p0  ;;  %s1923_s29 = smov [#allocation9]  }
  0x12   : > { %s2375_s26 = scalar_select %p2010_p4, 1, 0 }
  0x13   : > { %s2376_s27 = scalar_select %p2015_p6, 1, 0 }
  0x14   : > { %p2020_p8 = pnand %p1401_p5, %p187_p7  ;;  %s199_s30 = sshll.u32 %s1923_s29, 4  ;;  %s2024_s30 = int_to_ptr.vmem [resolvable:$true] %s199_s30 }
  0x15   : > { %2377 = sst [smem:[#allocation19_spill]] %s2376_s27  ;;  %s1924_s7 = smov [#allocation10]  }
  0x16   : > { %s2378_s28 = scalar_select %p2020_p8, 1, 0 }
  0x17   : > { %p1576_p9 = pneg %p2020_p8  ;;  %s212_s8 = sshll.u32 %s1924_s7, 4  ;;  %s2035_s8 = int_to_ptr.vmem [resolvable:$true] %s212_s8 }
  0x18   : > { %s1925_s9 = smov [#allocation12]   ;;  %s2380_s2 = sld [smem:[#allocation20_spill]] }
  0x19   : > { %p2031_p11 = pnand %p1576_p9, %p2367_p1  ;;  %s2037_s10 = sshll.u32 %s1925_s9, 4  ;;  %s226_s10 = int_to_ptr.vmem [resolvable:$true] %s2037_s10 }
  0x1b   : > { %p2047_p13 = pneg %p2031_p11 }
  0x1e   : > { %s1683_s13 = scalar_lea.hbm %s2380_s2, 512 }
  0x1f   : > { %p1684_p12 = scmp.ne.s32.totalorder %s2380_s2, %s1683_s13  ;;  %p1690_p5 = scmp.lt.u32.totalorder %s1683_s13, %s2380_s2 }
  0x21   : > { %p1686_p0 = pnand %p2047_p13, %p1684_p12 }
  0x23   : > { %p1687_p3 = pneg %p1686_p0 }
  0x25   : > { %p1692_p7 = pnand %p1690_p5, %p1687_p3 }
  0x27   : > { %1695 = shalt.err (!%p1692_p7)
}
  0x28   : > { %s1696_s29 = scalar_lea.vmem %s2024_s30, 512  ;;  %p1704_p2 = scmp.lt.s32.totalorder %s2024_s30, %s2024_s30 }
  0x29   : > { %p1697_p9 = scmp.ne.s32.totalorder %s2024_s30, %s1696_s29  ;;  %p1705_p6 = scmp.lt.s32.totalorder %s1696_s29, %s1696_s29 }
  0x2b   : > { %p1699_p10 = pnand %p1697_p9, %p2047_p13  ;;  %p1706_p12 = por %p1705_p6, %p1704_p2 }
  0x2d   : > { %p1700_p1 = pneg %p1699_p10 }
  0x2f   : > { %p1707_p0 = pnand %p1706_p12, %p1700_p1 }
  0x31   : > { %1710 = shalt.err (!%p1707_p0)
}
  0x32   : > { %s1926_s7 = smov 128   ;;  %s1927_s9 = smov 8  }
  0x33   : > { %1579 = dma.hbm_to_vmem [thread:$0]  (!%p2031_p11), %s2380_s2, 512, %s2024_s30, [#allocation8], %s1926_s7, %s1926_s7, %s1927_s9  }
  0x34   : > { %s2382_s3 = sld [smem:[#allocation21_spill]] }
  0x3a   : > { %s1711_s15 = scalar_lea.hbm %s2382_s3, 512 }
  0x3b   : > { %p1712_p1 = scmp.ne.s32.totalorder %s2382_s3, %s1711_s15  ;;  %p1718_p10 = scmp.lt.u32.totalorder %s1711_s15, %s2382_s3 }
  0x3d   : > { %p1714_p2 = pnand %p1712_p1, %p2047_p13 }
  0x3f   : > { %p1715_p6 = pneg %p1714_p2 }
  0x41   : > { %p1720_p3 = pnand %p1718_p10, %p1715_p6 }
  0x43   : > { %1723 = shalt.err (!%p1720_p3)
}
  0x44   : > { %s1724_s30 = scalar_lea.vmem %s2035_s8, 512  ;;  %p1732_p12 = scmp.lt.s32.totalorder %s2035_s8, %s2035_s8 }
  0x45   : > { %p1725_p5 = scmp.ne.s32.totalorder %s2035_s8, %s1724_s30  ;;  %p1733_p0 = scmp.lt.s32.totalorder %s1724_s30, %s1724_s30 }
  0x47   : > { %p1727_p7 = pnand %p1725_p5, %p2047_p13  ;;  %p1734_p1 = por %p1733_p0, %p1732_p12 }
  0x49   : > { %p1728_p9 = pneg %p1727_p7 }
  0x4b   : > { %p1735_p2 = pnand %p1734_p1, %p1728_p9 }
  0x4d   : > { %1738 = shalt.err (!%p1735_p2)
}
  0x4e   : > { %1582 = dma.hbm_to_vmem [thread:$0]  (!%p2031_p11), %s2382_s3, 512, %s2035_s8, [#allocation11], %s1926_s7, %s1926_s7, %s1927_s9  }
  0x4f   : > { %s2383_s4 = sld [smem:[#allocation22_spill]] }
  0x55   : > { %s1739_s14 = scalar_lea.hbm %s2383_s4, 512 }
  0x56   : > { %p1740_p6 = scmp.ne.s32.totalorder %s2383_s4, %s1739_s14  ;;  %p1746_p5 = scmp.lt.u32.totalorder %s1739_s14, %s2383_s4 }
  0x58   : > { %p1742_p10 = pnand %p1740_p6, %p2047_p13 }
  0x5a   : > { %p1743_p3 = pneg %p1742_p10 }
  0x5c   : > { %p1748_p7 = pnand %p1746_p5, %p1743_p3 }
  0x5e   : > { %1751 = shalt.err (!%p1748_p7)
}
  0x5f   : > { %s1752_s30 = scalar_lea.vmem %s226_s10, 512  ;;  %p1760_p1 = scmp.lt.s32.totalorder %s226_s10, %s226_s10 }
  0x60   : > { %p1753_p9 = scmp.ne.s32.totalorder %s226_s10, %s1752_s30  ;;  %p1761_p2 = scmp.lt.s32.totalorder %s1752_s30, %s1752_s30 }
  0x62   : > { %p1755_p12 = pnand %p1753_p9, %p2047_p13  ;;  %p1762_p4 = por %p1761_p2, %p1760_p1 }
  0x64   : > { %p1756_p0 = pneg %p1755_p12 }
  0x66   : > { %p1763_p8 = pnand %p1762_p4, %p1756_p0 }
  0x68   : > { %1766 = shalt.err (!%p1763_p8)
}
  0x69   : > { %1585 = dma.hbm_to_vmem [thread:$0]  (!%p2031_p11), %s2383_s4, 512, %s226_s10, [#allocation11], %s1926_s7, %s1926_s7, %s1927_s9  }
  0x6a   : > { %s44_s16 = sadd.s32 1, %s1909_s20  ;;  %s37_s6 = sadd.s32 1, %s1917_s22 }
  0x6b   : > { %p51_p4 = scmp.ne.s32.totalorder %s1909_s20, %s1905_s19  ;;  %p39_p8 = scmp.ge.s32.totalorder %s37_s6, 2 }
  0x6c   : > { %p52_p13 = scmp.eq.s32.totalorder %s1921_s23, 0  ;;  %p2384_p6 = scmp.eq.s32.totalorder %s2001_s24, 1 }
  0x6d   : > { %p1600_p3 = scmp.lt.s32.totalorder %s1921_s23, 2  ;;  %s2403_s6 = smov (%p39_p8, %s37_s6), 0 }
  0x6e   : > { %p2126_p10 = por %p2384_p6, %p51_p4  ;;  %p53_p5 = por %p52_p13, %p51_p4 }
  0x6f   : > { %s239_s12 = sand.u32 1, %s1909_s20   ;;  %s41_s13 = ssub.s32 %s1917_s22, %s2403_s6 }
  0x70   : > { %s2385_s11 = scalar_select %p2126_p10, 1, 0 }
  0x71   : > { %p42_p11 = scmp.eq.s32.totalorder %s41_s13, 0  ;;  %s2136_s10 = sshll.u32 %s239_s12, 3 }
  0x72   : > { %s1407_s7 = sshll.u32 %s1917_s22, 7  ;;  %s243_s25 = scalar_lea.vmem [#allocation4], %s2136_s10 }
  0x73   : > { %s2140_s9 = scalar_select %p42_p11, %s1909_s20, %s44_s16  }
  0x74   : > { %s2145_s17 = scalar_lea.hbm %s2361_s0, %s1407_s7  ;;  %s250_s29 = sshll.u32 %s243_s25, 4  ;;  %s2148_s29 = int_to_ptr.vmem [resolvable:$true] %s250_s29 }
  0x75   : > { %p2152_p7 = pnand %p1600_p3, %p53_p5  ;;  %s2159_s16 = scalar_lea.hbm %s2362_s1, %s1407_s7 }
  0x76   : > { %s257_s13 = sand.u32 1, %s1921_s23   ;;  %s240_s14 = scalar_lea.sflag [#allocation5], %s239_s12 }
  0x77   : > { %s1767_s15 = scalar_lea.hbm %s2145_s17, 128  ;;  %p1769_p12 = pneg %p2152_p7 }
  0x78   : > { %p1768_p9 = scmp.ne.s32.totalorder %s2145_s17, %s1767_s15  ;;  %s1772_s3 = scalar_lea.hbm %s2361_s0, 256 }
  0x79   : > { %p1773_p2 = scmp.lt.u32.totalorder %s2145_s17, %s2361_s0  ;;  %p1774_p4 = scmp.lt.u32.totalorder %s1772_s3, %s1767_s15 }
  0x7a   : > { %p1770_p0 = pnand %p1769_p12, %p1768_p9  ;;  %p1776_p13 = scmp.lt.u32.totalorder %s1767_s15, %s2145_s17 }
  0x7b   : > { %p1775_p8 = por %p1774_p4, %p1773_p2 }
  0x7c   : > { %p1771_p1 = pneg %p1770_p0 }
  0x7d   : > { %p1777_p6 = por %p1776_p13, %p1775_p8 }
  0x7f   : > { %p1778_p3 = pnand %p1777_p6, %p1771_p1 }
  0x81   : > { %1781 = shalt.err (!%p1778_p3)
}
  0x82   : > { %s1782_s12 = scalar_lea.vmem %s2148_s29, 128  ;;  %s1928_s2 = smov [#allocation4]  }
  0x83   : > { %p1783_p5 = scmp.ne.s32.totalorder %s2148_s29, %s1782_s12  ;;  %s1787_s7 = sshll.u32 %s1928_s2, 4  ;;  %s1788_s7 = int_to_ptr.vmem [resolvable:$false] %s1787_s7 }
  0x84   : > { %s1789_s4 = scalar_lea.vmem %s1788_s7, 256  ;;  %p1790_p0 = scmp.lt.s32.totalorder %s2148_s29, %s1788_s7 }
  0x85   : > { %p1785_p11 = pnand %p1783_p5, %p1769_p12  ;;  %p1791_p2 = scmp.lt.s32.totalorder %s1789_s4, %s1782_s12 }
  0x87   : > { %p1786_p9 = pneg %p1785_p11  ;;  %p1792_p4 = por %p1791_p2, %p1790_p0 }
  0x89   : > { %p1793_p8 = pnand %p1792_p4, %p1786_p9 }
  0x8b   : > { %1796 = shalt.err (!%p1793_p8)
}
  0x8c   : > { %1589 = dma.hbm_to_vmem [thread:$0]  (!%p2152_p7), %s2145_s17, 128, %s2148_s29, %s240_s14  }
  0x8d   : > { %s261_s3 = scalar_lea.vmem [#allocation7], %s2136_s10  ;;  %s258_s15 = scalar_lea.sflag [#allocation8], %s257_s13 }
  0x8e   : > { %s269_s27 = sshll.u32 %s261_s3, 4  ;;  %s1797_s25 = scalar_lea.hbm %s2159_s16, 128  ;;  %s270_s27 = int_to_ptr.vmem [resolvable:$true] %s269_s27 }
  0x8f   : > { %p1798_p1 = scmp.ne.s32.totalorder %s2159_s16, %s1797_s25  ;;  %s1802_s2 = scalar_lea.hbm %s2362_s1, 256 }
  0x90   : > { %p1803_p3 = scmp.lt.u32.totalorder %s2159_s16, %s2362_s1  ;;  %p1804_p5 = scmp.lt.u32.totalorder %s1802_s2, %s1797_s25 }
  0x91   : > { %p1800_p13 = pnand %p1798_p1, %p1769_p12  ;;  %p1806_p9 = scmp.lt.u32.totalorder %s1797_s25, %s2159_s16 }
  0x92   : > { %p1805_p11 = por %p1804_p5, %p1803_p3 }
  0x93   : > { %p1801_p6 = pneg %p1800_p13 }
  0x94   : > { %p1807_p0 = por %p1806_p9, %p1805_p11 }
  0x96   : > { %p1808_p2 = pnand %p1807_p0, %p1801_p6 }
  0x98   : > { %1811 = shalt.err (!%p1808_p2)
}
  0x99   : > { %s1812_s10 = scalar_lea.vmem %s270_s27, 128  ;;  %s1929_s17 = smov [#allocation7]  }
  0x9a   : > { %p1813_p4 = scmp.ne.s32.totalorder %s270_s27, %s1812_s10  ;;  %s1817_s29 = sshll.u32 %s1929_s17, 4  ;;  %s1818_s29 = int_to_ptr.vmem [resolvable:$false] %s1817_s29 }
  0x9b   : > { %s1819_s13 = scalar_lea.vmem %s1818_s29, 256  ;;  %p1820_p13 = scmp.lt.s32.totalorder %s270_s27, %s1818_s29 }
  0x9c   : > { %p1815_p8 = pnand %p1813_p4, %p1769_p12  ;;  %p1821_p10 = scmp.lt.s32.totalorder %s1819_s13, %s1812_s10 }
  0x9e   : > { %p1816_p1 = pneg %p1815_p8  ;;  %p1822_p3 = por %p1821_p10, %p1820_p13 }
  0xa0   : > { %p1823_p5 = pnand %p1822_p3, %p1816_p1 }
  0xa2   : > { %1826 = shalt.err (!%p1823_p5)
}
  0xa3   : > { %1592 = dma.hbm_to_vmem [thread:$0]  (!%p2152_p7), %s2159_s16, 128, %s270_s27, %s258_s15  }
  0xa4   : > { %p2387_p6 = scmp.ne.s32.totalorder %s2378_s28, 0 }
  0xa5   : > { %s2212_s14 = sand.u32 (!%p2387_p6), 1, %s1905_s19   ;;  %p2388_p10 = scmp.ne.s32.totalorder (!%p2387_p6), %s2375_s26, 0 }
  0xa6   : > { %278 = sbr.rel (%p2387_p6) target bundleno = 1409 (0x581), region = 40  ;;  %s2215_s3 = sshll.u32 (!%p2387_p6), %s2212_s14, 3 }
  0xa7   : > { %s281_s25 = scalar_lea.sflag (!%p2387_p6), [#allocation5], %s2212_s14  ;;  %s284_s8 = scalar_lea.vmem (!%p2387_p6), [#allocation4], %s2215_s3 }
  0xad   : > { %1880 = dma.done.wait (%p2388_p10), %s281_s25, 128  }
  0xae   : > { %1882 = vsyncadd (%p2388_p10), %s281_s25, 4294967168  ;;  %s289_s28 = sand.u32 1, %s2001_s24   ;;  %s293_s16 = scalar_lea.vmem [#allocation7], %s2215_s3 }
  0xaf   : > { %s290_s30 = scalar_lea.sflag [#allocation8], %s289_s28 }
  0xb0   : > { %1884 = dma.done.wait (%p2388_p10), %s290_s30, 128  }
  0xb1   : > { %1886 = vsyncadd (%p2388_p10), %s290_s30, 4294967168  ;;  %p2389_p7 = scmp.eq.s32.totalorder %s2001_s24, 0 }
  0xb3   : > { %1888 = dma.done.wait (%p2389_p7), [#allocation8], 512   ;;  %p2390_p12 = pmov %p2389_p7 }
  0xb4   : > { %p2391_p11 = pmov %p2389_p7 }
  0xb5   : > { %1890 = vsyncadd (%p2390_p12), [#allocation8], 4294966784 }
  0xb6   : > { %1892 = dma.done.wait (%p2391_p11), [#allocation11], 1024   ;;  %p2392_p9 = pmov %p2389_p7 }
  0xb7   : > { %v1930_v0 = vmov 0.0|0.0   ;;  %vm1931_vm0 = vmmov 0   ;;  %v1932_v1 = vmov 0.0   ;;  %v342_v2 = vld [vmem:[#allocation10] sm:$0xff]  ;;  %v343_v3 = vld [vmem:[#allocation10 + $0x8] sm:$0xff]  ;;  %v344_v4 = vld [vmem:[#allocation10 + $0x10] sm:$0xff] }
  0xb8   : > { %1894 = vsyncadd (%p2392_p9), [#allocation11], 4294966272  ;;  %1540 = vmatprep.subr.bf16.mxu0 %v1930_v0  ;;  %1475 = vmatprep.mubr.msk.f32.mxu0 %vm1931_vm0, %v1932_v1  ;;  %v1541_v5 = vpack.c.bf16 %v343_v3, %v342_v2  ;;  %v345_v6 = vld [vmem:[#allocation10 + $0x18] sm:$0xff]  ;;  %v421_v8 = vld [vmem:[#allocation12] sm:$0xff]  ;;  %vm346_vm1 = vcmask 261120   ;;  %vm578_vm2 = vcmask 64512  }
  0xb9   : > { %1546 = vmatprep.subr.bf16.mxu1 %v1930_v0  ;;  %1486 = vmatprep.mubr.msk.f32.mxu1 %vm1931_vm0, %v1932_v1  ;;  %v1544_v7 = vpack.c.bf16 %v345_v6, %v344_v4  ;;  %v422_v9 = vld [vmem:[#allocation12 + $0x8] sm:$0xff]  ;;  %v497_v10 = vld [vmem:[#allocation9] sm:$0xff]  ;;  %v499_v15 = vld [vmem:[#allocation9 + $0x10] sm:$0xff]  ;;  %s1933_s24 = smov 112   ;;  %s1934_s26 = smov 120   ;;  %vm1248_vm3 = vcmask 130048  }
  0xba   : > { %1542 = vmatpush3.bf16.msra.mxu0 %v1541_v5  ;;  %v498_v11 = vld [vmem:[#allocation9 + $0x8] sm:$0xff]  ;;  %v1547_v12 = vpack.c.bf16 %v422_v9, %v421_v8  ;;  %v500_v16 = vld [vmem:[#allocation9 + $0x18] sm:$0xff]  ;;  %v423_v19 = vld [vmem:[#allocation12 + $0x10] sm:$0xff]  ;;  %s1935_s27 = smov 104   ;;  %s1936_s15 = smov 8   ;;  %vm1250_vm4 = vcmask 195584  }
  0xbb   : > { %1543 = vmatprep.subr.bf16.mxu0 %v1930_v0  ;;  %v341_v13 = vld [vmem:[%s284_s8] sm:$0xff]  ;;  %v1553_v14 = vpack.c.bf16 %v498_v11, %v497_v10  ;;  %v1556_v17 = vpack.c.bf16 %v500_v16, %v499_v15  ;;  %v496_v18 = vld [vmem:[%s293_s16] sm:$0xff]  ;;  %s1937_s12 = smov 16   ;;  %s1938_s2 = smov 24  }
  0xbc   : > { %1548 = vmatpush3.bf16.msra.mxu1 %v1547_v12  ;;  %v424_v20 = vld [vmem:[#allocation12 + $0x18] sm:$0xff]  ;;  %s1433_s7 = sshll.u32 %s1913_s21, 7  ;;  %s336_s4 = scalar_lea.vmem [#allocation13], %s2215_s3 }
  0xbd   : > { %1549 = vmatprep.subr.bf16.mxu1 %v1930_v0  ;;  %v1550_v21 = vpack.c.bf16 %v424_v20, %v423_v19  ;;  %s1268_s10 = sshll.u32 %s336_s4, 4  ;;  %s2311_s13 = scalar_lea.hbm %s2366_s5, %s1433_s7  ;;  %s2313_s10 = int_to_ptr.vmem [resolvable:$true] %s1268_s10 }
  0xbe   : > { %1545 = vmatpush3.bf16.msra.mxu0 %v1544_v7  ;;  %s1254_s21 = scalar_lea.sflag [#allocation6], %s2212_s14  ;;  %s1827_s3 = scalar_lea.vmem %s2313_s10, 128 }
  0xbf   : > { %1552 = vmatprep.subr.bf16.mxu0 %v1930_v0  ;;  %p1828_p0 = scmp.ne.s32.totalorder %s2313_s10, %s1827_s3  ;;  %p2393_p2 = scmp.ne.s32.totalorder %s2385_s11, 0 }
  0xc0   : > { %1551 = vmatpush3.bf16.msra.mxu1 %v1550_v21  ;;  %s1939_s25 = smov [#allocation13]  }
  0xc1   : > { %1476 = vmatmul.mubr.msk.f32.vlgmr.msra.gmra.mrb[0].mxu0 %vm346_vm1, %v341_v13  ;;  %1500 = vmatprep.subr.mxu1 %v1932_v1  ;;  %p1829_p4 = pnand %p1828_p0, %p2393_p2  ;;  %s1831_s8 = sshll.u32 %s1939_s25, 4  ;;  %s1832_s8 = int_to_ptr.vmem [resolvable:$false] %s1831_s8 }
  0xc2   : > { %1554 = vmatpush3.bf16.msra.mxu0 %v1553_v14  ;;  %1497 = vmatprep.mubr.msk.f32.mxu0 %vm1931_vm0, %v1932_v1  ;;  %s1833_s28 = scalar_lea.vmem %s1832_s8, 256  ;;  %p1834_p1 = scmp.lt.s32.totalorder %s2313_s10, %s1832_s8 }
  0xc3   : > { %1555 = vmatprep.subr.bf16.mxu0 %v1930_v0  ;;  %1487 = vmatmul.mubr.msk.f32.vlgmr.msra.gmra.mrb[0].mxu1 %vm346_vm1, %v341_v13  ;;  %p1830_p8 = pneg %p1829_p4  ;;  %p1835_p13 = scmp.lt.s32.totalorder %s1833_s28, %s1827_s3 }
  0xc4   : > { %1502 = vmatprep.mubr.msk.f32.mxu1 %vm1931_vm0, %v1932_v1 }
  0xc5   : > { %p1836_p3 = por %p1835_p13, %p1834_p1 }
  0xc6   : > { %1557 = vmatpush3.bf16.msra.mxu0 %v1556_v17 }
  0xc7   : > { %1510 = vmatprep.subr.mxu0 %v1932_v1  ;;  %p1837_p5 = pnand %p1836_p3, %p1830_p8 }
  0xc9   : > { %1498 = vmatmul.mubr.msk.f32.vlgmr.msra.gmra.mrb[2].mxu0 %vm346_vm1, %v496_v18 }
  0xca   : > { %1512 = vmatprep.mubr.msk.f32.mxu0 %vm1931_vm0, %v1932_v1 }
 0x194   : > { %v416_v22 = vpop.f32.mrb[0].mxu0 }
 0x195   : > { %420 = vst.msk [vmem:[#allocation2] sm:$0xff] %vm346_vm1, %v416_v22  ;;  %v1477_v23 = vpop.f32.mrb[1].mxu0 }
 0x196   : > { %v491_v28 = vpop.f32.mrb[0].mxu1 }
 0x197   : > { %495 = vst.msk [vmem:[#allocation3] sm:$0xff] %vm346_vm1, %v491_v28  ;;  %v1488_v29 = vpop.f32.mrb[1].mxu1 }
 0x19c   : > { %v576_v24 = vld [vmem:[#allocation2] sm:$0xff]  ;;  %v571_v25 = vpop.f32.mrb[2].mxu0 }
 0x19d   : > { %907 = vrot.lane.b32.xlu1 %v576_v24, %s1933_s24  ;;  %741 = vrot.lane.b32.xlu0 %v576_v24, %s1934_s26  ;;  %v575_v26 = vmul.f32 0.35355338, %v571_v25  ;;  %v1499_v27 = vpop.f32.mrb[3].mxu0 }
 0x19e   : > { %1501 = vmatpush3.xpose.msk.msra.mxu1 %vm578_vm2, %v576_v24  ;;  %v577_v36 = vld [vmem:[#allocation3] sm:$0xff] }
 0x19f   : > { %1505 = vmatprep.subr.mxu1 %v1932_v1 }
 0x1a1   : > { %1503 = vmatmul.mubr.msk.f32.vlgmr.msra.gmra.mrb[2].mxu1 %vm578_vm2, %v575_v26  ;;  %905 = vrot.lane.b32.xlu1 %v575_v26, %s1933_s24 }
 0x1a2   : > { %739 = vrot.lane.b32.xlu0 %v575_v26, %s1934_s26  ;;  %1507 = vmatprep.mubr.msk.f32.mxu1 %vm1931_vm0, %v1932_v1 }
 0x1a3   : > { %1506 = vmatpush3.msra.mxu1 %v577_v36 }
 0x1a4   : > { %1515 = vmatprep.subr.mxu1 %v1932_v1 }
 0x1a5   : > { %1070 = vrot.lane.b32.xlu1 %v575_v26, %s1935_s27 }
 0x1a6   : > { %1072 = vrot.lane.b32.xlu0 %v576_v24, %s1935_s27 }
 0x20f   : > { %v742_v30 = vpop.permute.xlu0 %741  ;;  %v908_v31 = vpop.permute.xlu1 %907 }
 0x210   : > { %1511 = vmatpush3.xpose.msk.msra.mxu0 %vm578_vm2, %v742_v30 }
 0x211   : > { %1520 = vmatprep.subr.mxu0 %v1932_v1 }
 0x213   : > { %v906_v33 = vpop.permute.xlu1 %905 }
 0x214   : > { %v740_v32 = vpop.permute.xlu0 %739 }
 0x215   : > { %1513 = vmatmul.mubr.msk.f32.vlgmr.msra.gmra.mrb[4].mxu0 %vm578_vm2, %v740_v32 }
 0x216   : > { %1521 = vmatpush3.xpose.msk.msra.mxu0 %vm578_vm2, %v908_v31  ;;  %1522 = vmatprep.mubr.msk.f32.mxu0 %vm1931_vm0, %v1932_v1 }
 0x217   : > { %1530 = vmatprep.subr.mxu0 %v1932_v1  ;;  %v1071_v35 = vpop.permute.xlu1 %1070 }
 0x218   : > { %v1073_v34 = vpop.permute.xlu0 %1072 }
 0x219   : > { %1523 = vmatmul.mubr.msk.f32.vlgmr.msra.gmra.mrb[6].mxu0 %vm578_vm2, %v906_v33 }
 0x21a   : > { %1531 = vmatpush3.xpose.msk.msra.mxu0 %vm578_vm2, %v1073_v34  ;;  %1532 = vmatprep.mubr.msk.f32.mxu0 %vm1931_vm0, %v1932_v1 }
 0x21d   : > { %1533 = vmatmul.mubr.msk.f32.vlgmr.msra.gmra.mrb[8].mxu0 %vm578_vm2, %v1071_v35 }
 0x274   : > { %v651_v37 = vpop.f32.mrb[2].mxu1 }
 0x275   : > { %v1504_v38 = vpop.f32.mrb[3].mxu1  ;;  %v655_v39 = vsel %vm578_vm2, %v651_v37, -inf }
 0x276   : > { %656 = vmax.xlane.f32.xlu0 %v655_v39 }
 0x2e8   : > { %v813_v40 = vpop.f32.mrb[4].mxu0 }
 0x2e9   : > { %v1514_v41 = vpop.f32.mrb[5].mxu0  ;;  %v817_v42 = vsel %vm578_vm2, %v813_v40, -inf }
 0x2ea   : > { %818 = vmax.xlane.f32.xlu1 %v817_v42 }
 0x2ec   : > { %v979_v43 = vpop.f32.mrb[6].mxu0 }
 0x2ed   : > { %v1524_v44 = vpop.f32.mrb[7].mxu0  ;;  %v983_v45 = vsel %vm578_vm2, %v979_v43, -inf }
 0x2ee   : > { %984 = vmax.xlane.f32.xlu0 %v983_v45 }
 0x2f0   : > { %v1144_v46 = vpop.f32.mrb[8].mxu0 }
 0x2f1   : > { %v1534_v47 = vpop.f32.mrb[9].mxu0  ;;  %v1148_v48 = vsel %vm578_vm2, %v1144_v46, -inf }
 0x2f2   : > { %1149 = vmax.xlane.f32.xlu0 %v1148_v48 }
 0x2fb   : > { %829 = vrot.lane.b32.xlu1 %v577_v36, %s1934_s26 }
 0x303   : > { %v657_v49 = vpop.xlane.xlu0 %656 }
 0x304   : > { %v658_v50 = vsub.f32 %v651_v37, %v657_v49 }
 0x306   : > { %v659_v51 = vmul.f32 1.442695, %v658_v50 }
 0x308   : > { %1667 = vpow2.f32 %v659_v51 }
 0x312   : > { %v1668_v52 = vpop.eup %1667 }
 0x313   : > { %v661_v53 = vsel %vm578_vm2, %v1668_v52, 0.0 }
 0x31f   : > { %662 = vadd.xlane.f32.xlu1 %v661_v53 }
 0x377   : > { %v819_v54 = vpop.xlane.xlu1 %818 }
 0x378   : > { %v820_v55 = vsub.f32 %v813_v40, %v819_v54 }
 0x37a   : > { %v821_v56 = vmul.f32 1.442695, %v820_v55 }
 0x37b   : > { %v985_v57 = vpop.xlane.xlu0 %984  ;;  %v830_v6 = vpop.permute.xlu1 %829 }
 0x37c   : > { %1669 = vpow2.f32 %v821_v56  ;;  %v986_v58 = vsub.f32 %v979_v43, %v985_v57 }
 0x37e   : > { %v987_v59 = vmul.f32 1.442695, %v986_v58 }
 0x37f   : > { %v1150_v60 = vpop.xlane.xlu0 %1149 }
 0x380   : > { %1671 = vpow2.f32 %v987_v59  ;;  %v1151_v61 = vsub.f32 %v1144_v46, %v1150_v60 }
 0x382   : > { %v1152_v62 = vmul.f32 1.442695, %v1151_v61 }
 0x384   : > { %1673 = vpow2.f32 %v1152_v62 }
 0x386   : > { %v1670_v63 = vpop.eup %1669 }
 0x387   : > { %v823_v0 = vsel %vm578_vm2, %v1670_v63, 0.0 }
 0x388   : > { %824 = vadd.xlane.f32.xlu0 %v823_v0 }
 0x38a   : > { %v1672_v2 = vpop.eup %1671 }
 0x38b   : > { %v989_v3 = vsel %vm578_vm2, %v1672_v2, 0.0 }
 0x38c   : > { %990 = vadd.xlane.f32.xlu1 %v989_v3 }
 0x38e   : > { %v1674_v4 = vpop.eup %1673 }
 0x38f   : > { %v1154_v5 = vsel %vm578_vm2, %v1674_v4, 0.0 }
 0x390   : > { %1155 = vadd.xlane.f32.xlu0 %v1154_v5 }
 0x39d   : > { %1159 = vrot.lane.b32.xlu1 %v577_v36, %s1935_s27 }
 0x3a6   : > { %994 = vrot.lane.b32.xlu0 %v577_v36, %s1933_s24 }
 0x3ac   : > { %v663_v7 = vpop.xlane.xlu1 %662 }
 0x3ad   : > { %1675 = vrcp.f32 %v663_v7 }
 0x3b7   : > { %v1676_v8 = vpop.eup %1675 }
 0x3b8   : > { %v665_v9 = vmul.f32 %v1676_v8, %v1668_v52 }
 0x3ba   : > { %1508 = vmatmul.mubr.msk.f32.vlgmr.msra.gmra.mrb[4].mxu1 %vm578_vm2, %v665_v9 }
 0x3bb   : > { %1516 = vmatpush3.msra.mxu1 %v830_v6  ;;  %1517 = vmatprep.mubr.msk.f32.mxu1 %vm1931_vm0, %v1932_v1 }
 0x3bc   : > { %1525 = vmatprep.subr.mxu1 %v1932_v1 }
 0x415   : > { %v825_v10 = vpop.xlane.xlu0 %824 }
 0x416   : > { %1677 = vrcp.f32 %v825_v10 }
 0x419   : > { %v991_v11 = vpop.xlane.xlu1 %990 }
 0x41a   : > { %1679 = vrcp.f32 %v991_v11 }
 0x41d   : > { %v1156_v12 = vpop.xlane.xlu0 %1155  ;;  %v1160_v18 = vpop.permute.xlu1 %1159 }
 0x41e   : > { %1681 = vrcp.f32 %v1156_v12 }
 0x420   : > { %v1678_v13 = vpop.eup %1677 }
 0x421   : > { %v827_v14 = vmul.f32 %v1678_v13, %v1670_v63  ;;  %v995_v15 = vpop.permute.xlu0 %994 }
 0x423   : > { %1518 = vmatmul.mubr.msk.f32.vlgmr.msra.gmra.mrb[6].mxu1 %vm578_vm2, %v827_v14 }
 0x424   : > { %v1680_v16 = vpop.eup %1679  ;;  %1526 = vmatpush3.msra.mxu1 %v995_v15  ;;  %1527 = vmatprep.mubr.msk.f32.mxu1 %vm1931_vm0, %v1932_v1 }
 0x425   : > { %v993_v17 = vmul.f32 %v1680_v16, %v1672_v2  ;;  %1535 = vmatprep.subr.mxu1 %v1932_v1 }
 0x427   : > { %1528 = vmatmul.mubr.msk.f32.vlgmr.msra.gmra.mrb[8].mxu1 %vm578_vm2, %v993_v17 }
 0x428   : > { %v1682_v19 = vpop.eup %1681  ;;  %1536 = vmatpush3.msra.mxu1 %v1160_v18  ;;  %1537 = vmatprep.mubr.msk.f32.mxu1 %vm1931_vm0, %v1932_v1 }
 0x429   : > { %v1158_v20 = vmul.f32 %v1682_v19, %v1674_v4 }
 0x42b   : > { %1538 = vmatmul.mubr.msk.f32.vlgmr.msra.gmra.mrb[10].mxu1 %vm578_vm2, %v1158_v20 }
 0x48d   : > { %v735_v21 = vpop.f32.mrb[4].mxu1 }
 0x48e   : > { %v1509_v22 = vpop.f32.mrb[5].mxu1 }
 0x4f6   : > { %v901_v23 = vpop.f32.mrb[6].mxu1 }
 0x4f7   : > { %1236 = vrot.lane.b32.xlu1 %v901_v23, %s1936_s15  ;;  %v1519_v24 = vpop.f32.mrb[7].mxu1 }
 0x4fa   : > { %v1066_v25 = vpop.f32.mrb[8].mxu1 }
 0x4fb   : > { %1240 = vrot.lane.b32.xlu0 %v1066_v25, %s1937_s12  ;;  %v1529_v26 = vpop.f32.mrb[9].mxu1 }
 0x4fe   : > { %v1231_v27 = vpop.f32.mrb[10].mxu1 }
 0x4ff   : > { %1244 = vrot.lane.b32.xlu1 %v1231_v27, %s1938_s2  ;;  %v1539_v1 = vpop.f32.mrb[11].mxu1 }
 0x569   : > { %v1237_v28 = vpop.permute.xlu1 %1236 }
 0x56a   : > { %v1247_v30 = vsel %vm578_vm2, %v735_v21, %v1237_v28 }
 0x56d   : > { %v1241_v29 = vpop.permute.xlu0 %1240 }
 0x56e   : > { %v1249_v31 = vsel %vm1248_vm3, %v1247_v30, %v1241_v29 }
 0x571   : > { %v1245_v32 = vpop.permute.xlu1 %1244 }
 0x572   : > { %v1251_v33 = vsel %vm1250_vm4, %v1249_v31, %v1245_v32 }
 0x573   : > { %1252 = vst.msk [vmem:[%s336_s4] sm:$0xff] %vm346_vm1, %v1251_v33 }
 0x574   : > { %1840 = shalt.err (!%p1837_p5)
}
 0x575   : > { %s1841_s14 = scalar_lea.hbm %s2311_s13, 128  ;;  %s1845_s24 = scalar_lea.hbm %s2366_s5, 256 }
 0x576   : > { %p1842_p6 = scmp.ne.s32.totalorder %s2311_s13, %s1841_s14  ;;  %p1846_p12 = scmp.lt.u32.totalorder %s2311_s13, %s2366_s5 }
 0x577   : > { %p1847_p11 = scmp.lt.u32.totalorder %s1845_s24, %s1841_s14  ;;  %p1849_p0 = scmp.lt.u32.totalorder %s1841_s14, %s2311_s13 }
 0x578   : > { %p1843_p10 = pnand %p1842_p6, %p2393_p2 }
 0x579   : > { %p1848_p9 = por %p1847_p11, %p1846_p12 }
 0x57a   : > { %p1844_p7 = pneg %p1843_p10 }
 0x57b   : > { %p1850_p4 = por %p1849_p0, %p1848_p9 }
 0x57d   : > { %p1851_p8 = pnand %p1850_p4, %p1844_p7 }
 0x57f   : > { %1854 = shalt.err (!%p1851_p8)
}
 0x580   : > { %1574 = dma.vmem_to_hbm [thread:$0]  (%p2393_p2), %s2313_s10, 128, %s2311_s13, %s1254_s21  }
 0x581 PF: > { %s2394_s15 = sld [smem:[#allocation19_spill]]  ;;  %s1280_s12 = sand.u32 1, %s1901_s18  }
 0x582   : > { %p2396_p13 = scmp.ge.s32.totalorder %s1921_s23, 2  ;;  %s1281_s2 = scalar_lea.sflag [#allocation6], %s1280_s12 }
 0x587   : > { %p2395_p1 = scmp.ne.s32.totalorder %s2394_s15, 0 }
 0x589   : > { %p1594_p3 = pnand %p2396_p13, %p2395_p1 }
 0x58b   : > { %1896 = dma.done.wait (!%p1594_p3), %s1281_s2, 128  }
 0x58c   : > { %1898 = vsyncadd (!%p1594_p3), %s1281_s2, 4294967168  ;;  %s25_s23 = sadd.s32 1, %s1921_s23   ;;  %s2397_s18 = smov %s1905_s19 }
 0x58d   : > { %p22_p5 = scmp.ge.s32.totalorder %s25_s23, 4   ;;  %s2398_s19 = smov %s1909_s20 }
 0x58e   : > { %s2399_s20 = smov %s2140_s9  ;;  %s2400_s21 = smov %s1917_s22 }
 0x58f   : > { %s2401_s22 = smov %s2403_s6  ;;  %24 = sbr.rel (!%p22_p5) target bundleno = 13 (0xd), region = 114 }
 0x596   :  { %1286 = vsyncpa [#allocation5], 1 }
 0x597   :  { %1288 = vsyncpa [#allocation5 + $0x1], 1 }
 0x598   :  { %1289 = vsyncpa [#allocation8], 1 }
 0x599   :  { %1291 = vsyncpa [#allocation8 + $0x1], 1 }
 0x59a   :  { %1292 = vsyncpa [#allocation11], 1 }
 0x59b   :  { %1293 = vsyncpa [#allocation6], 1 }
 0x59c   :  { %1295 = vsyncpa [#allocation6 + $0x1], 1 }

</bundles_post_ra>
